<compile_context>
chip_gen: v5e
topology: v5e:2x2
jax: 0.10.0
libtpu: 0.0.40
codegen_flags: <defaults>
</compile_context>

<pallas_src>
import math

import jax
import jax.numpy as jnp
from jax import lax
from jax.experimental import pallas as pl
from jax.experimental.pallas import tpu as pltpu


def _round_up(x, m):
    return ((x + m - 1) // m) * m


def _make_attention_kernel(lx, lz, bb, unroll):
    """lx = attention length (= conv2 channels = 116), lz = Z sequence length,
    bb = batches per grid step, unroll = fori_loop unroll factor."""

    def kernel(x_ref, z_ref, w1t_ref, b1_ref, w2t_ref, b2_ref, o_ref, vt_scr):
        # x_ref : (bb, CXP, LXP)   channels-first X, zero padded (channels and positions)
        # z_ref : (bb*lz, Cz=lx)   flattened Z block, lane-dense, UNPADDED
        # w1t   : (CXP, CXP)       zero-padded W1^T
        # b1    : (1, CXP)         zero-padded bias
        # w2t   : (Cz, LXP)        W2^T, output (key) dim zero-padded to 128
        # b2    : (1, LXP)         zero-padded bias
        # o_ref : (bb*lz, Cz)      output block, lane-dense at the true width (116)
        # vt_scr: (bb*lz, LXP)     f32 scratch holding the V^T projection
        lxp = x_ref.shape[-1]

        # ---- V^T projection for ALL bb batches as ONE tall MXU matmul (M = bb*lz) ----
        # vt[r, k] = (Z @ W2^T + b2)[r, k] == V[k, r]; padded key columns k >= lx are 0.
        vt_scr[...] = (
            jnp.dot(z_ref[...], w2t_ref[...], preferred_element_type=jnp.float32)
            + b2_ref[...]
        )

        w1t = w1t_ref[...]
        b1 = b1_ref[...]

        def body(b, carry):
            # Q = X^T @ W1^T + b1.  One cheap canonical (CXP,128)->(128,CXP) XLU transpose
            # keeps the matmuls in standard (M,K)x(K,N) form while X is stored
            # channels-first (dense DMA, small VMEM).                         (lxp, CXP)
            q = jnp.dot(x_ref[b].T, w1t, preferred_element_type=jnp.float32) + b1

            # S = Q @ K = Q @ Q^T (exactly symmetric), rows/cols = positions. (lxp, lxp)
            s = lax.dot_general(q, q, (((1,), (1,)), ((), ())),
                                preferred_element_type=jnp.float32)

            # Build att^T directly via the symmetry of S: rows = keys, cols = queries.
            # Padded keys are pushed to -1e30 by a per-batch (lxp,1) iota compare — exact
            # reference softmax semantics at the cost of 1 vreg (not a hoisted 128x128
            # mask held live across the unrolled loop).  Padded query columns are never
            # stored; padded tail batches are dropped by the edge-block writeback.
            key_id = lax.broadcasted_iota(jnp.int32, (lxp, 1), 0)
            sm = jnp.where(key_id < lx, s, jnp.float32(-1e30))
            m = jnp.max(sm, axis=0, keepdims=True)           # (1, lxp) per-query max
            e = jnp.exp(sm - m)                              # exactly 0 on padded keys
            l = jnp.sum(e, axis=0, keepdims=True)            # (1, lxp) denominators
            r0 = pl.reciprocal(l, approx=True)               # EUP slot (otherwise idle)
            r = r0 * (2.0 - l * r0)                          # Newton step -> f32 accuracy

            # out = (att @ V)^T = V^T @ softmax(S)^T; normalization applied AFTER the
            # matmul: scale the small (lz, lxp) product instead of the (lxp, lxp) exp.
            off = b * lz
            if lz % 8 == 0:
                off = pl.multiple_of(off, 8)
            vt_b = vt_scr[pl.ds(off, lz), :]                                  # (lz, lxp)
            out_b = jnp.dot(vt_b, e, preferred_element_type=jnp.float32) * r  # (lz, lxp)
            o_ref[pl.ds(off, lz), :] = out_b[:, :lx].astype(o_ref.dtype)
            return carry

        lax.fori_loop(0, bb, body, None, unroll=unroll)

    return kernel


def attention_forward(Z, X, W1, b1, W2, b2, *, block_b=None):
    """Z: (B, Lz, 116), X: (B, Lx=116, 3). Returns (B, Lz, 116)."""
    B, Lx, Cx = X.shape
    Bz, Lz, Cz = Z.shape
    assert B == Bz and Lx == Cz, "torch.bmm in the reference forward requires Lx == 116"

    LXP = _round_up(Lx, 128)     # attention / key length: 116 -> 128 lanes
    CXP = _round_up(Cx, 8)       # conv1 channels: 3 -> 8 sublanes

    # ---- batches per grid step --------------------------------------------------------
    # Overhead-bound op (~0.35us/grid step): take as few, as large, steps as VMEM allows.
    # Target a 2-step grid (even and >= 2 so both v7x TCs get work; minimal serial
    # overhead on single-TC v5e/v6e), capped by a conservative VMEM row budget (~7 MiB
    # total, fits the default scoped limit on every generation incl. v5e's 16 MiB).
    MAX_ROWS = 2048            # flattened (Bb*Lz) rows per step
    MAX_BB = 256               # cap on batches per step (bounds the X block)
    if block_b is None:
        if B <= 1:
            Bb = max(B, 1)
        else:
            Bb = (B + 1) // 2
            Bb = min(Bb, MAX_BB, max(1, MAX_ROWS // max(Lz, 1)))
    else:
        Bb = max(1, int(block_b))
    if Bb < B:
        # flattened (Bb*Lz, Cz) Z/out blocks need sublane (8) alignment unless the block
        # covers the whole array
        align = 8 // math.gcd(Lz, 8)
        Bb = _round_up(Bb, align)
    if Bb >= B:
        Bb = B                                     # single full block (alignment exempt)
    nsteps = (B + Bb - 1) // Bb
    Bp = nsteps * Bb
    unroll = True if Bb <= 8 else 4                # partial unroll for large Bb

    # ---- inputs: only the tiny tensors are copied --------------------------------------
    # X -> channels-first (Bp, CXP, LXP), zero padded: dense 512 B DMA rows and a single
    # (8,128) VMEM tile per batch.  ~4 KB/batch copy (negligible).
    Xp = jnp.pad(jnp.transpose(X, (0, 2, 1)),
                 ((0, Bp - B), (0, CXP - Cx), (0, LXP - Lx)))
    # Z: NO pad, NO copy — a free reshape to (B*Lz, Cz); the kernel contracts K = Cz.
    Z2 = Z.reshape(B * Lz, Cz)
    # Weights / biases (tiny).
    w1t = jnp.pad(W1.T, ((0, CXP - Cx), (0, CXP - Cx)))           # (CXP, CXP)
    b1r = jnp.pad(b1.reshape(1, Cx), ((0, 0), (0, CXP - Cx)))     # (1, CXP)
    w2t = jnp.pad(W2.T, ((0, 0), (0, LXP - Cz)))                  # (Cz, LXP)
    b2r = jnp.pad(b2.reshape(1, Cz), ((0, 0), (0, LXP - Cz)))     # (1, LXP)

    out2 = pl.pallas_call(
        _make_attention_kernel(Lx, Lz, Bb, unroll),
        out_shape=jax.ShapeDtypeStruct((B * Lz, Cz), Z.dtype),
        grid=(nsteps,),
        in_specs=[
            pl.BlockSpec((Bb, CXP, LXP), lambda i: (i, 0, 0)),    # X   channels-first
            pl.BlockSpec((Bb * Lz, Cz), lambda i: (i, 0)),        # Z   flattened, no copy
            pl.BlockSpec((CXP, CXP), lambda i: (0, 0)),           # W1^T (replicated)
            pl.BlockSpec((1, CXP), lambda i: (0, 0)),             # b1
            pl.BlockSpec((Cz, LXP), lambda i: (0, 0)),            # W2^T (replicated)
            pl.BlockSpec((1, LXP), lambda i: (0, 0)),             # b2
        ],
        out_specs=pl.BlockSpec((Bb * Lz, Cz), lambda i: (i, 0)),  # lane-dense true width
        scratch_shapes=[pltpu.VMEM((Bb * Lz, LXP), jnp.float32)],
        compiler_params=pltpu.CompilerParams(
            dimension_semantics=("parallel",)),
    )(Xp, Z2, w1t, b1r, w2t, b2r)

    # Free (metadata-only) reshape — no wrapper-side slice / copy of the output.
    return out2.reshape(B, Lz, Cz)


def attention_reference(Z, X, W1, b1, W2, b2):
    """Pure-JAX reference matching PyTorch semantics exactly."""
    K = jnp.einsum('oi,bli->bol', W1, X) + b1[None, :, None]     # (B, 3, Lx)
    Q = jnp.transpose(K, (0, 2, 1))                              # (B, Lx, 3)
    V = jnp.einsum('oi,bli->bol', W2, Z) + b2[None, :, None]     # (B, 116, Lz)
    att = jax.nn.softmax(jnp.einsum('bqc,bck->bqk', Q, K), axis=-1)
    out = jnp.einsum('bqk,bkl->bql', att, V)                     # (B, Lx, Lz)
    return jnp.transpose(out, (0, 2, 1))                         # (B, Lz, 116)


if __name__ == "__main__":
    key = jax.random.PRNGKey(0)
    kx, kz, kw1, kb1, kw2, kb2 = jax.random.split(key, 6)

    B, Lx, Cx = 2, 116, 3    # Lx must equal 116 (conv2 channels) for the bmm
    Lz, Cz = 8, 116

    X = jax.random.normal(kx, (B, Lx, Cx), dtype=jnp.float32)
    Z = jax.random.normal(kz, (B, Lz, Cz), dtype=jnp.float32)

    # Deterministic parameter init (shapes from Conv1d(3,3,1) / Conv1d(116,116,1)).
    bound1 = 1.0 / jnp.sqrt(3.0)
    bound2 = 1.0 / jnp.sqrt(116.0)
    W1 = jax.random.uniform(kw1, (Cx, Cx), minval=-bound1, maxval=bound1, dtype=jnp.float32)
    b1 = jax.random.uniform(kb1, (Cx,), minval=-bound1, maxval=bound1, dtype=jnp.float32)
    W2 = jax.random.uniform(kw2, (Cz, Cz), minval=-bound2, maxval=bound2, dtype=jnp.float32)
    b2 = jax.random.uniform(kb2, (Cz,), minval=-bound2, maxval=bound2, dtype=jnp.float32)

    out = attention_forward(Z, X, W1, b1, W2, b2)
    out = jax.block_until_ready(out)

    ref = attention_reference(Z, X, W1, b1, W2, b2)
    assert out.shape == (B, Lz, Cz), out.shape
    # Tolerance 1e-4: EUP approximate reciprocal + one Newton step leaves
    # ~1e-6..1e-5 relative error in the softmax normalization.
    assert jnp.allclose(out, ref, atol=1e-4, rtol=1e-4), float(jnp.max(jnp.abs(out - ref)))

    print("KERNEL_OK")
</pallas_src>

<mosaic_0001>
module attributes {stable_mosaic.version = 11 : i64} {
  func.func @kernel(%arg0: i32, %arg1: memref<1x8x128xf32, #tpu.memory_space<vmem>>, %arg2: memref<8x116xf32, #tpu.memory_space<vmem>>, %arg3: memref<8x8xf32, #tpu.memory_space<vmem>>, %arg4: memref<1x8xf32, #tpu.memory_space<vmem>>, %arg5: memref<116x128xf32, #tpu.memory_space<vmem>>, %arg6: memref<1x128xf32, #tpu.memory_space<vmem>>, %arg7: memref<8x116xf32, #tpu.memory_space<vmem>>, %arg8: memref<8x128xf32, #tpu.memory_space<vmem>>) attributes {dimension_semantics = [#tpu.dimension_semantics<parallel>], iteration_bounds = array<i64: 2>, scalar_prefetch = 0 : i64, scratch_operands = 1 : i64, tpu.core_type = #tpu.core_type<tc>, window_params = [{transform_indices = @transform_0, window_bounds = array<i64: 1, 8, 128>}, {transform_indices = @transform_1, window_bounds = array<i64: 8, 116>}, {pipeline_mode = #tpu.pipeline_mode<synchronous>, transform_indices = @transform_2, window_bounds = array<i64: 8, 8>}, {pipeline_mode = #tpu.pipeline_mode<synchronous>, transform_indices = @transform_3, window_bounds = array<i64: 1, 8>}, {pipeline_mode = #tpu.pipeline_mode<synchronous>, transform_indices = @transform_4, window_bounds = array<i64: 116, 128>}, {pipeline_mode = #tpu.pipeline_mode<synchronous>, transform_indices = @transform_5, window_bounds = array<i64: 1, 128>}, {transform_indices = @transform_6, window_bounds = array<i64: 8, 116>}]} {
    %c0 = arith.constant 0 : index
    %c0_0 = arith.constant 0 : index
    %0 = vector.load %arg2[%c0, %c0_0] : memref<8x116xf32, #tpu.memory_space<vmem>>, vector<8x116xf32>
    %c0_1 = arith.constant 0 : index
    %c0_2 = arith.constant 0 : index
    %1 = vector.load %arg5[%c0_1, %c0_2] : memref<116x128xf32, #tpu.memory_space<vmem>>, vector<116x128xf32>
    %cst = arith.constant dense<0.000000e+00> : vector<8x128xf32>
    %2 = tpu.matmul %0, %1, %cst {dimension_numbers = #tpu.dot_dimension_numbers<[1], [0], [0], [1], [0, 0, 1, 1], [], []>} : vector<8x116xf32>, vector<116x128xf32>, vector<8x128xf32> -> vector<8x128xf32>
    %c0_3 = arith.constant 0 : index
    %c0_4 = arith.constant 0 : index
    %3 = vector.load %arg6[%c0_3, %c0_4] : memref<1x128xf32, #tpu.memory_space<vmem>>, vector<1x128xf32>
    %4 = vector.broadcast %3 : vector<1x128xf32> to vector<8x128xf32>
    %5 = arith.addf %2, %4 : vector<8x128xf32>
    %c0_5 = arith.constant 0 : index
    %c0_6 = arith.constant 0 : index
    %6 = vector.load %arg8[%c0_5, %c0_6] : memref<8x128xf32, #tpu.memory_space<vmem>>, vector<8x128xf32>
    tpu.vector_store %arg8[%c0_5, %c0_6], %5 {strides = array<i32>} : memref<8x128xf32, #tpu.memory_space<vmem>>, vector<8x128xf32>,
    %c0_7 = arith.constant 0 : index
    %c0_8 = arith.constant 0 : index
    %7 = vector.load %arg3[%c0_7, %c0_8] : memref<8x8xf32, #tpu.memory_space<vmem>>, vector<8x8xf32>
    %c0_9 = arith.constant 0 : index
    %c0_10 = arith.constant 0 : index
    %8 = vector.load %arg4[%c0_9, %c0_10] : memref<1x8xf32, #tpu.memory_space<vmem>>, vector<1x8xf32>
    %c0_i32 = arith.constant 0 : i32
    %9 = arith.index_cast %c0_i32 : i32 to index
    %c0_11 = arith.constant 0 : index
    %c0_12 = arith.constant 0 : index
    %10 = vector.load %arg1[%9, %c0_11, %c0_12] : memref<1x8x128xf32, #tpu.memory_space<vmem>>, vector<1x8x128xf32>
    %11 = vector.shape_cast %10 : vector<1x8x128xf32> to vector<8x128xf32>
    %12 = tpu.transpose %11, [1, 0] : vector<8x128xf32> -> vector<128x8xf32>
    %cst_13 = arith.constant dense<0.000000e+00> : vector<128x8xf32>
    %13 = tpu.matmul %12, %7, %cst_13 {dimension_numbers = #tpu.dot_dimension_numbers<[1], [0], [0], [1], [0, 0, 1, 1], [], []>} : vector<128x8xf32>, vector<8x8xf32>, vector<128x8xf32> -> vector<128x8xf32>
    %14 = vector.broadcast %8 : vector<1x8xf32> to vector<128x8xf32>
    %15 = arith.addf %13, %14 : vector<128x8xf32>
    %cst_14 = arith.constant dense<0.000000e+00> : vector<128x128xf32>
    %16 = tpu.matmul %15, %15, %cst_14 {dimension_numbers = #tpu.dot_dimension_numbers<[1], [1], [0], [0], [0, 0, 1, 0], [], []>} : vector<128x8xf32>, vector<128x8xf32>, vector<128x128xf32> -> vector<128x128xf32>
    %17 = tpu.iota {dimensions = array<i32: 0>} : vector<128x1xi32>
    %c116_i32 = arith.constant 116 : i32
    %18 = vector.broadcast %c116_i32 : i32 to vector<128x1xi32>
    %19 = arith.cmpi slt, %17, %18 : vector<128x1xi32>
    %cst_15 = arith.constant -1.000000e+30 : f32
    %20 = vector.shape_cast %19 : vector<128x1xi1> to vector<128x1xi1>
    %21 = vector.broadcast %20 : vector<128x1xi1> to vector<128x128xi1>
    %22 = vector.broadcast %cst_15 : f32 to vector<128x128xf32>
    %23 = arith.select %21, %16, %22 : vector<128x128xi1>, vector<128x128xf32>
    %cst_16 = arith.constant dense<0xFF800000> : vector<128xf32>
    %24 = vector.multi_reduction <maximumf>, %23, %cst_16 [0] : vector<128x128xf32> to vector<128xf32>
    %25 = vector.shape_cast %24 : vector<128xf32> to vector<1x128xf32>
    %26 = vector.broadcast %25 : vector<1x128xf32> to vector<128x128xf32>
    %27 = arith.subf %23, %26 : vector<128x128xf32>
    %28 = math.exp %27 : vector<128x128xf32>
    %cst_17 = arith.constant dense<0.000000e+00> : vector<128xf32>
    %29 = vector.multi_reduction <add>, %28, %cst_17 [0] : vector<128x128xf32> to vector<128xf32>
    %30 = vector.shape_cast %29 : vector<128xf32> to vector<1x128xf32>
    %31 = tpu.reciprocal %30 {approx = true} : vector<1x128xf32> -> vector<1x128xf32>
    %32 = arith.mulf %30, %31 : vector<1x128xf32>
    %cst_18 = arith.constant 2.000000e+00 : f32
    %33 = vector.broadcast %cst_18 : f32 to vector<1x128xf32>
    %34 = arith.subf %33, %32 : vector<1x128xf32>
    %35 = arith.mulf %31, %34 : vector<1x128xf32>
    %c8_i32 = arith.constant 8 : i32
    %36 = arith.muli %c0_i32, %c8_i32 : i32
    %37 = tpu.assume_multiple %36, 8 : i32
    %38 = arith.index_cast %37 : i32 to index
    %c0_19 = arith.constant 0 : index
    %39 = vector.load %arg8[%38, %c0_19] : memref<8x128xf32, #tpu.memory_space<vmem>>, vector<8x128xf32>
    %cst_20 = arith.constant dense<0.000000e+00> : vector<8x128xf32>
    %40 = tpu.matmul %39, %28, %cst_20 {dimension_numbers = #tpu.dot_dimension_numbers<[1], [0], [0], [1], [0, 0, 1, 1], [], []>} : vector<8x128xf32>, vector<128x128xf32>, vector<8x128xf32> -> vector<8x128xf32>
    %41 = vector.broadcast %35 : vector<1x128xf32> to vector<8x128xf32>
    %42 = arith.mulf %40, %41 : vector<8x128xf32>
    %43 = vector.extract_strided_slice %42 {offsets = [0, 0], sizes = [8, 116], strides = [1, 1]} : vector<8x128xf32> to vector<8x116xf32>
    %44 = arith.index_cast %37 : i32 to index
    %c0_21 = arith.constant 0 : index
    %45 = vector.load %arg7[%44, %c0_21] : memref<8x116xf32, #tpu.memory_space<vmem>>, vector<8x116xf32>
    tpu.vector_store %arg7[%44, %c0_21], %43 {strides = array<i32>} : memref<8x116xf32, #tpu.memory_space<vmem>>, vector<8x116xf32>,
    %c1_i32 = arith.constant 1 : i32
    return
  }
  func.func @transform_0(%arg0: i32) -> (i32, i32, i32) {
    %c0_i32 = arith.constant 0 : i32
    %c0_i32_0 = arith.constant 0 : i32
    %c0_i32_1 = arith.constant 0 : i32
    return %arg0, %c0_i32, %c0_i32_0 : i32, i32, i32
  }
  func.func @transform_1(%arg0: i32) -> (i32, i32) {
    %c0_i32 = arith.constant 0 : i32
    %c0_i32_0 = arith.constant 0 : i32
    return %arg0, %c0_i32 : i32, i32
  }
  func.func @transform_2(%arg0: i32) -> (i32, i32) {
    %c0_i32 = arith.constant 0 : i32
    %c0_i32_0 = arith.constant 0 : i32
    %c0_i32_1 = arith.constant 0 : i32
    return %c0_i32, %c0_i32_0 : i32, i32
  }
  func.func @transform_3(%arg0: i32) -> (i32, i32) {
    %c0_i32 = arith.constant 0 : i32
    %c0_i32_0 = arith.constant 0 : i32
    %c0_i32_1 = arith.constant 0 : i32
    return %c0_i32, %c0_i32_0 : i32, i32
  }
  func.func @transform_4(%arg0: i32) -> (i32, i32) {
    %c0_i32 = arith.constant 0 : i32
    %c0_i32_0 = arith.constant 0 : i32
    %c0_i32_1 = arith.constant 0 : i32
    return %c0_i32, %c0_i32_0 : i32, i32
  }
  func.func @transform_5(%arg0: i32) -> (i32, i32) {
    %c0_i32 = arith.constant 0 : i32
    %c0_i32_0 = arith.constant 0 : i32
    %c0_i32_1 = arith.constant 0 : i32
    return %c0_i32, %c0_i32_0 : i32, i32
  }
  func.func @transform_6(%arg0: i32) -> (i32, i32) {
    %c0_i32 = arith.constant 0 : i32
    %c0_i32_0 = arith.constant 0 : i32
    return %arg0, %c0_i32 : i32, i32
  }
}

</mosaic_0001>

<bundles_post_ra>
// kernel: tpu_custom_call.1
= control target key start
LH: loop header
LB: loop body
LE: loop exit
PB: predicated region body
PF: predicated region fallthrough
CT: control target
= control target key end

     0   :  { %s1807_s0 = inlined_call_operand.hbm [shape: f32[2,8,128], index: 0, kind: input, shape index: {}]   ;;  %s1808_s1 = inlined_call_operand.hbm [shape: f32[16,116], index: 1, kind: input, shape index: {}]   ;;  %s1809_s2 = inlined_call_operand.hbm [shape: f32[8,8], index: 2, kind: input, shape index: {}]   ;;  %s1810_s3 = inlined_call_operand.vmem [shape: f32[1,8], index: 3, kind: input, shape index: {}]   ;;  %s1811_s4 = inlined_call_operand.hbm [shape: f32[116,128], index: 4, kind: input, shape index: {}]   ;;  %s1812_s5 = inlined_call_operand.vmem [shape: f32[1,128], index: 5, kind: input, shape index: {}]   ;;  %s1813_s6 = inlined_call_operand.hbm [shape: f32[16,116], index: 6, kind: output, shape index: {}]  }
   0x1   :  { %1817 = sst [smem:[#allocation20_spill]] %s1809_s2 }
   0x2   :  { %1818 = sst [smem:[#allocation21_spill]] %s1811_s4 }
   0x3   :  { %11 = vsyncpa [#allocation4], 0 }
   0x4   :  { %13 = vsyncpa [#allocation4 + $0x1], 0 }
   0x5   :  { %14 = vsyncpa [#allocation7], 0 }
   0x6   :  { %16 = vsyncpa [#allocation7 + $0x1], 0 }
   0x7   :  { %17 = vsyncpa [#allocation10], 0 }
   0x8   :  { %18 = vsyncpa [#allocation5], 0 }
   0x9   :  { %20 = vsyncpa [#allocation5 + $0x1], 0  ;;  %s1430_s21 = smov 0   ;;  %s1432_s22 = smov 0  }
   0xa   :  { %s1434_s23 = smov 0   ;;  %s1436_s24 = smov 0  }
   0xb LB: > { %1819 = sst [smem:[#allocation17_spill]] %s1385_s23  ;;  %s1451_s25 = sadd.s32 4294967295, %s1389_s24   ;;  %s1389_s24 = sphi %s1436_s24, %s1830_s24   ;;  %s1385_s23 = sphi %s1434_s23, %s1832_s23   ;;  %s1381_s22 = sphi %s1432_s22, %s1834_s22   ;;  %s1377_s21 = sphi %s1430_s21, %s1833_s21  }
   0xc   : > { %s979_s26 = sadd.s32 4294967294, %s1389_s24   ;;  %p46_p0 = scmp.ne.s32.totalorder %s1381_s22, %s1377_s21 }
   0xd   : > { %p47_p1 = scmp.eq.s32.totalorder %s1451_s25, 0  ;;  %p180_p2 = scmp.eq.s32.totalorder %s1451_s25, 1 }
   0xe   : > { %p186_p3 = scmp.eq.s32.totalorder %s979_s26, 1  ;;  %p980_p5 = scmp.ge.s32.totalorder %s1389_s24, 1 }
   0xf   : > { %p1460_p4 = por %p47_p1, %p46_p0  ;;  %p193_p7 = scmp.lt.s32.totalorder %s1389_s24, 3 }
  0x10   : > { %p1465_p6 = por %p186_p3, %p46_p0  ;;  %s1822_s2 = sld [smem:[#allocation20_spill]] }
  0x11   : > { %p1473_p8 = pnand %p980_p5, %p193_p7  ;;  %s1391_s9 = smov [#allocation8]  }
  0x12   : > { %s207_s10 = sshll.u32 %s1391_s9, 4  ;;  %s1824_s4 = sld [smem:[#allocation21_spill]]  ;;  %s208_s10 = int_to_ptr.vmem [resolvable:$true] %s207_s10 }
  0x13   : > { %p1094_p10 = pneg %p1473_p8  ;;  %s1392_s14 = smov [#allocation9]  }
  0x14   : > { %s221_s15 = sshll.u32 %s1392_s14, 4  ;;  %s1393_s16 = smov 128   ;;  %s222_s15 = int_to_ptr.vmem [resolvable:$true] %s221_s15 }
  0x15   : > { %p1095_p11 = pnand %p1094_p10, %p47_p1  ;;  %s1394_s17 = smov 8  }
  0x16   : > { %s205_s7 = sshll.u32 %s1822_s2, 4  ;;  %s1486_s18 = sadd.s32 1, %s1389_s24   ;;  %s206_s7 = int_to_ptr.hbm [resolvable:$true] %s205_s7 }
  0x17   : > { %1097 = dma.hbm_to_vmem [thread:$0]  (!%p1095_p11), %s206_s7, 128, %s208_s10, [#allocation7]  }
  0x18   : > { %s219_s13 = sshll.u32 %s1824_s4, 4  ;;  %1825 = sst [smem:[#allocation18_spill]] %s1486_s18  ;;  %s220_s13 = int_to_ptr.hbm [resolvable:$true] %s219_s13 }
  0x19   : > { %1100 = dma.hbm_to_vmem [thread:$0]  (!%p1095_p11), %s220_s13, 1920, %s222_s15, [#allocation10], %s1393_s16, %s1393_s16, %s1394_s17  }
  0x1a   : > { %s30_s19 = ssub.s32 %s1389_s24, %s1486_s18  ;;  %s33_s20 = sadd.s32 1, %s1385_s23 }
  0x1b   : > { %p31_p12 = scmp.eq.s32.totalorder %s30_s19, 0  ;;  %p40_p13 = scmp.ne.s32.totalorder %s1385_s23, %s1381_s22 }
  0x1c   : > { %p41_p0 = scmp.eq.s32.totalorder %s1389_s24, 0  ;;  %p1114_p7 = scmp.lt.s32.totalorder %s1389_s24, 2 }
  0x1d   : > { %s1495_s26 = scalar_select %p31_p12, %s1385_s23, %s33_s20  }
  0x1e   : > { %p42_p3 = por %p41_p0, %p40_p13  ;;  %p1499_p5 = por %p180_p2, %p40_p13 }
  0x1f   : > { %1826 = sst [smem:[#allocation19_spill]] %s1495_s26  ;;  %s238_s30 = sand.u32 1, %s1385_s23  }
  0x20   : > { %s1505_s7 = sshll.u32 %s238_s30, 3  ;;  %s985_s9 = sshll.u32 %s1389_s24, 3 }
  0x21   : > { %s246_s12 = scalar_lea.hbm %s1807_s0, %s985_s9  ;;  %s242_s13 = scalar_lea.vmem [#allocation3], %s1505_s7 }
  0x22   : > { %s250_s14 = sshll.u32 %s242_s13, 4  ;;  %s248_s15 = sshll.u32 %s246_s12, 4  ;;  %s251_s14 = int_to_ptr.vmem [resolvable:$true] %s250_s14  ;;  %s249_s15 = int_to_ptr.hbm [resolvable:$true] %s248_s15 }
  0x23   : > { %p1512_p10 = pnand %p1114_p7, %p42_p3  ;;  %s265_s20 = scalar_lea.hbm %s1808_s1, %s985_s9 }
  0x24   : > { %s257_s2 = sand.u32 1, %s1389_s24   ;;  %s239_s4 = scalar_lea.sflag [#allocation4], %s238_s30 }
  0x25   : > { %s1251_s26 = sshra.s32 %s249_s15, 4  ;;  %p1255_p11 = pneg %p1512_p10  ;;  %s1252_s26 = int_to_ptr.hbm [resolvable:$true] %s1251_s26 }
  0x26   : > { %s1253_s10 = scalar_lea.hbm %s1252_s26, 8  ;;  %s1258_s13 = scalar_lea.hbm %s1807_s0, 16 }
  0x27   : > { %p1254_p2 = scmp.ne.s32.totalorder %s1252_s26, %s1253_s10  ;;  %p1259_p0 = scmp.lt.s32.totalorder %s1252_s26, %s1807_s0 }
  0x28   : > { %p1260_p3 = scmp.lt.s32.totalorder %s1258_s13, %s1253_s10 }
  0x29   : > { %p1256_p12 = pnand %p1255_p11, %p1254_p2 }
  0x2a   : > { %p1261_p7 = por %p1260_p3, %p1259_p0 }
  0x2b   : > { %p1257_p13 = pneg %p1256_p12 }
  0x2d   : > { %p1262_p9 = pnand %p1261_p7, %p1257_p13 }
  0x2f   : > { %1265 = shalt.err (!%p1262_p9)
}
  0x30   : > { %1104 = dma.hbm_to_vmem [thread:$0]  (!%p1512_p10), %s249_s15, 128, %s251_s14, %s239_s4  }
  0x31   : > { %s267_s30 = sshll.u32 %s265_s20, 4  ;;  %s261_s9 = scalar_lea.vmem [#allocation6], %s1505_s7  ;;  %s268_s30 = int_to_ptr.hbm [resolvable:$true] %s267_s30 }
  0x32   : > { %s269_s23 = sshll.u32 %s261_s9, 4  ;;  %s258_s11 = scalar_lea.sflag [#allocation7], %s257_s2  ;;  %s270_s23 = int_to_ptr.vmem [resolvable:$true] %s269_s23 }
  0x33   : > { %s1281_s12 = sshra.s32 %s268_s30, 4  ;;  %s1288_s13 = scalar_lea.hbm %s1808_s1, 16  ;;  %s1282_s12 = int_to_ptr.hbm [resolvable:$true] %s1281_s12 }
  0x34   : > { %s1283_s18 = scalar_lea.hbm %s1282_s12, 8  ;;  %p1289_p9 = scmp.lt.s32.totalorder %s1282_s12, %s1808_s1 }
  0x35   : > { %p1284_p2 = scmp.ne.s32.totalorder %s1282_s12, %s1283_s18  ;;  %p1290_p0 = scmp.lt.s32.totalorder %s1288_s13, %s1283_s18 }
  0x37   : > { %p1286_p12 = pnand %p1284_p2, %p1255_p11  ;;  %p1291_p3 = por %p1290_p0, %p1289_p9 }
  0x39   : > { %p1287_p13 = pneg %p1286_p12 }
  0x3b   : > { %p1292_p7 = pnand %p1291_p3, %p1287_p13 }
  0x3d   : > { %1295 = shalt.err (!%p1292_p7)
}
  0x3e   : > { %1107 = dma.hbm_to_vmem [thread:$0]  (!%p1512_p10), %s268_s30, 128, %s270_s23, %s258_s11  }
  0x3f   : > { %278 = sbr.rel (%p1473_p8) target bundleno = 932 (0x3a4), region = 44  ;;  %s1548_s2 = sand.u32 (!%p1473_p8), 1, %s1381_s22  }
  0x40   : > { %s1551_s7 = sshll.u32 (!%p1473_p8), %s1548_s2, 3  ;;  %s281_s14 = scalar_lea.sflag (!%p1473_p8), [#allocation4], %s1548_s2 }
  0x41   : > { %s284_s18 = scalar_lea.vmem (!%p1473_p8), [#allocation3], %s1551_s7 }
  0x44   : > { %1356 = dma.done.wait (%p1460_p4), %s281_s14, 128  }
  0x45   : > { %1358 = vsyncadd (%p1460_p4), %s281_s14, 4294967168  ;;  %s290_s23 = sand.u32 1, %s1451_s25   ;;  %s294_s15 = scalar_lea.vmem [#allocation6], %s1551_s7 }
  0x46   : > { %s291_s8 = scalar_lea.sflag [#allocation7], %s290_s23 }
  0x47   : > { %1360 = dma.done.wait (%p1460_p4), %s291_s8, 128  }
  0x48   : > { %1362 = vsyncadd (%p1460_p4), %s291_s8, 4294967168 }
  0x49   : > { %1364 = dma.done.wait (%p47_p1), [#allocation7], 128  }
  0x4a   : > { %1366 = vsyncadd (%p47_p1), [#allocation7], 4294967168 }
  0x4b   : > { %1368 = dma.done.wait (%p47_p1), [#allocation10], 1920  }
  0x4c   : > { %1370 = vsyncadd (%p47_p1), [#allocation10], 4294965376  ;;  %v390_v0 = vld [vmem:[%s284_s18] sm:$0xff]  ;;  %vm426_vm0 = vcmask 64512   ;;  %v354_v26 = vld [vmem:[#allocation9 + $0x70] sm:$0xf] }
  0x4d   : > { %391 = vxpose.xlu0.b32.start.end [1/1] (short) %v390_v0, 128  ;;  %v388_v1 = vld [vmem:[#allocation8] sm:$0xff]  ;;  %vm363_vm1 = vcmask 1043456   ;;  %v353_v27 = vld [vmem:[#allocation9 + $0x68] sm:$0xff]  ;;  %v352_v29 = vld [vmem:[#allocation9 + $0x60] sm:$0xff]  ;;  %vm359_vm2 = vcmask 949248   ;;  %s1045_s30 = sshll.u32 %s1451_s25, 3 }
  0x4e   : > { %490 = vmatpush.msra.mxu1 %v388_v1  ;;  %994 = vmatpush.msk.msra.mxu0 %vm363_vm1, %v354_v26  ;;  %v351_v30 = vld [vmem:[#allocation9 + $0x58] sm:$0xff]  ;;  %v350_v31 = vld [vmem:[#allocation9 + $0x50] sm:$0xff]  ;;  %v349_v32 = vld [vmem:[#allocation9 + $0x48] sm:$0xff]  ;;  %s862_s12 = scalar_lea.hbm %s1813_s6, %s1045_s30  ;;  %s338_s26 = scalar_lea.vmem [#allocation11], %s1551_s7 }
  0x4f   : > { %v348_v34 = vld [vmem:[#allocation9 + $0x40] sm:$0xff]  ;;  %v347_v35 = vld [vmem:[#allocation9 + $0x38] sm:$0xff]  ;;  %v346_v36 = vld [vmem:[#allocation9 + $0x30] sm:$0xff]  ;;  %s864_s10 = sshll.u32 %s338_s26, 4  ;;  %s866_s13 = sshll.u32 %s862_s12, 4  ;;  %s865_s10 = int_to_ptr.vmem [resolvable:$true] %s864_s10  ;;  %s867_s13 = int_to_ptr.hbm [resolvable:$true] %s866_s13 }
  0x50   : > { %369 = vmatpush.msra.mxu0 %v353_v27  ;;  %v345_v37 = vld [vmem:[#allocation9 + $0x28] sm:$0xff]  ;;  %v344_v39 = vld [vmem:[#allocation9 + $0x20] sm:$0xff]  ;;  %v343_v40 = vld [vmem:[#allocation9 + $0x18] sm:$0xff]  ;;  %s852_s17 = scalar_lea.sflag [#allocation5], %s1548_s2  ;;  %s1325_s4 = sshra.s32 %s867_s13, 4  ;;  %s1326_s4 = int_to_ptr.hbm [resolvable:$true] %s1325_s4 }
  0x51   : > { %v342_v41 = vld [vmem:[#allocation9 + $0x10] sm:$0xff]  ;;  %v341_v42 = vld [vmem:[#allocation9 + $0x8] sm:$0xff]  ;;  %v340_v44 = vld [vmem:[#allocation9] sm:$0xff]  ;;  %s1327_s25 = scalar_lea.hbm %s1326_s4, 8  ;;  %s1331_s7 = scalar_lea.hbm %s1813_s6, 16 }
  0x52   : > { %370 = vmatpush.msra.mxu0 %v352_v29  ;;  %v1610_v48 = vld [vmem:[%s1810_s3] ss:$0 sm:$0xff]  ;;  %v339_v56 = vld [vmem:[%s294_s15] sm:$0xff]  ;;  %p1328_p1 = scmp.ne.s32.totalorder %s1326_s4, %s1327_s25  ;;  %p1332_p10 = scmp.lt.s32.totalorder %s1326_s4, %s1813_s6 }
  0x53   : > { %p1333_p11 = scmp.lt.s32.totalorder %s1331_s7, %s1327_s25 }
  0x54   : > { %371 = vmatpush.msra.mxu0 %v351_v30  ;;  %p1329_p4 = pnand %p1328_p1, %p1499_p5 }
  0x55   : > { %p1334_p2 = por %p1333_p11, %p1332_p10 }
  0x56   : > { %372 = vmatpush.msra.mxu0 %v350_v31  ;;  %p1330_p8 = pneg %p1329_p4 }
  0x58   : > { %373 = vmatpush.msra.mxu0 %v349_v32  ;;  %p1335_p12 = pnand %p1334_p2, %p1330_p8 }
  0x5a   : > { %374 = vmatpush.msra.mxu0 %v348_v34 }
  0x5c   : > { %375 = vmatpush.msra.mxu0 %v347_v35 }
  0x5e   : > { %376 = vmatpush.msra.mxu0 %v346_v36 }
  0x60   : > { %377 = vmatpush.msra.mxu0 %v345_v37 }
  0x62   : > { %378 = vmatpush.msra.mxu0 %v344_v39 }
  0x64   : > { %379 = vmatpush.msra.mxu0 %v343_v40 }
  0x66   : > { %380 = vmatpush.msra.mxu0 %v342_v41 }
  0x68   : > { %381 = vmatpush.msra.mxu0 %v341_v42 }
  0x6a   : > { %382 = vmatpush.msra.mxu0 %v340_v44 }
  0x6b   : > { %995 = vmatmul.msk.f32.vlgmr.msra.gmra.mxu0 %vm359_vm2, %v339_v56 }
  0xf1   : > { %v407_v2 = vpop.trf.xlu0 }
  0xf2   : > { %996 = vmatmul.msk.f32.vlgmr.msra.gmra.mxu1 %vm426_vm0, %v407_v2 }
  0xf9   : > { %v408_v3 = vpop.trf.xlu0 }
  0xfa   : > { %997 = vmatmul.msk.f32.gmra.mxu1 %vm426_vm0, %v408_v3 }
 0x101   : > { %v409_v4 = vpop.trf.xlu0 }
 0x102   : > { %998 = vmatmul.msk.f32.gmra.mxu1 %vm426_vm0, %v409_v4 }
 0x109   : > { %v410_v5 = vpop.trf.xlu0 }
 0x10a   : > { %999 = vmatmul.msk.f32.gmra.mxu1 %vm426_vm0, %v410_v5  ;;  %v1724_v5 = vpop.f32.mrf.mxu0 }
 0x111   : > { %v411_v6 = vpop.trf.xlu0 }
 0x112   : > { %1000 = vmatmul.msk.f32.gmra.mxu1 %vm426_vm0, %v411_v6 }
 0x119   : > { %v412_v7 = vpop.trf.xlu0 }
 0x11a   : > { %1001 = vmatmul.msk.f32.gmra.mxu1 %vm426_vm0, %v412_v7 }
 0x121   : > { %v413_v8 = vpop.trf.xlu0 }
 0x122   : > { %1002 = vmatmul.msk.f32.gmra.mxu1 %vm426_vm0, %v413_v8 }
 0x129   : > { %v414_v9 = vpop.trf.xlu0 }
 0x12a   : > { %1003 = vmatmul.msk.f32.gmra.mxu1 %vm426_vm0, %v414_v9 }
 0x131   : > { %v415_v10 = vpop.trf.xlu0 }
 0x132   : > { %1004 = vmatmul.msk.f32.gmra.mxu1 %vm426_vm0, %v415_v10 }
 0x139   : > { %v416_v11 = vpop.trf.xlu0 }
 0x13a   : > { %1005 = vmatmul.msk.f32.gmra.mxu1 %vm426_vm0, %v416_v11 }
 0x141   : > { %v417_v12 = vpop.trf.xlu0 }
 0x142   : > { %1006 = vmatmul.msk.f32.gmra.mxu1 %vm426_vm0, %v417_v12 }
 0x149   : > { %v418_v13 = vpop.trf.xlu0 }
 0x14a   : > { %1007 = vmatmul.msk.f32.gmra.mxu1 %vm426_vm0, %v418_v13 }
 0x151   : > { %v419_v14 = vpop.trf.xlu0 }
 0x152   : > { %1008 = vmatmul.msk.f32.gmra.mxu1 %vm426_vm0, %v419_v14 }
 0x159   : > { %v420_v15 = vpop.trf.xlu0 }
 0x15a   : > { %1009 = vmatmul.msk.f32.gmra.mxu1 %vm426_vm0, %v420_v15 }
 0x161   : > { %v421_v16 = vpop.trf.xlu0 }
 0x162   : > { %1010 = vmatmul.msk.f32.gmra.mxu1 %vm426_vm0, %v421_v16 }
 0x169   : > { %v422_v17 = vpop.trf.xlu0 }
 0x16a   : > { %1011 = vmatmul.msk.f32.gmra.mxu1 %vm426_vm0, %v422_v17  ;;  %v653_v17 = vlaneseq }
 0x16f   : > { %v1589_v18 = vpop.f32.mrf.mxu1 }
 0x170   : > { %v493_v2 = vadd.f32 %v1610_v48, %v1589_v18  ;;  %v654_v18 = vshrl.u32 %v653_v17, 7 }
 0x177   : > { %v1591_v19 = vpop.f32.mrf.mxu1 }
 0x178   : > { %v496_v1 = vadd.f32 %v1610_v48, %v1591_v19 }
 0x17f   : > { %v1593_v20 = vpop.f32.mrf.mxu1 }
 0x180   : > { %v499_v0 = vadd.f32 %v1610_v48, %v1593_v20 }
 0x187   : > { %v1595_v21 = vpop.f32.mrf.mxu1 }
 0x188   : > { %v502_v63 = vadd.f32 %v1610_v48, %v1595_v21 }
 0x18f   : > { %v1597_v22 = vpop.f32.mrf.mxu1 }
 0x190   : > { %v505_v62 = vadd.f32 %v1610_v48, %v1597_v22 }
 0x197   : > { %v1599_v23 = vpop.f32.mrf.mxu1 }
 0x198   : > { %v508_v61 = vadd.f32 %v1610_v48, %v1599_v23  ;;  %v668_v23 = vadd.s32 112, %v654_v18 }
 0x19a   : > { %vm684_vm3 = vcmp.lt.s32.totalorder %v668_v23, 116 }
 0x19f   : > { %v1601_v24 = vpop.f32.mrf.mxu1 }
 0x1a0   : > { %v511_v60 = vadd.f32 %v1610_v48, %v1601_v24 }
 0x1a7   : > { %v1603_v25 = vpop.f32.mrf.mxu1 }
 0x1a8   : > { %v514_v59 = vadd.f32 %v1610_v48, %v1603_v25 }
 0x1af   : > { %v1605_v28 = vpop.f32.mrf.mxu1 }
 0x1b0   : > { %v517_v58 = vadd.f32 %v1610_v48, %v1605_v28 }
 0x1b7   : > { %v519_v33 = vpop.f32.mrf.mxu1 }
 0x1b8   : > { %v520_v57 = vadd.f32 %v1610_v48, %v519_v33 }
 0x1bf   : > { %v522_v38 = vpop.f32.mrf.mxu1 }
 0x1c0   : > { %v523_v55 = vadd.f32 %v1610_v48, %v522_v38 }
 0x1c7   : > { %v525_v43 = vpop.f32.mrf.mxu1 }
 0x1c8   : > { %v526_v54 = vadd.f32 %v1610_v48, %v525_v43 }
 0x1cf   : > { %v528_v45 = vpop.f32.mrf.mxu1 }
 0x1d0   : > { %v529_v53 = vadd.f32 %v1610_v48, %v528_v45 }
 0x1d7   : > { %v531_v46 = vpop.f32.mrf.mxu1 }
 0x1d8   : > { %v1631_v52 = vadd.f32 %v1610_v48, %v531_v46 }
 0x1df   : > { %v534_v47 = vpop.f32.mrf.mxu1 }
 0x1e0   : > { %v1622_v51 = vadd.f32 %v1610_v48, %v534_v47 }
 0x1e7   : > { %v537_v49 = vpop.f32.mrf.mxu1 }
 0x1e8   : > { %v1613_v50 = vadd.f32 %v1610_v48, %v537_v49 }
 0x1ea   : > { %1012 = vmatpush.xpose.msk.msrb.mxu0 %vm426_vm0, %v1613_v50  ;;  %1048 = vmatpush.xpose.msk.msra.mxu2 %vm426_vm0, %v1613_v50 }
 0x1eb   : > { %1049 = vmatpush.xpose.msk.msra.mxu3 %vm426_vm0, %v1613_v50 }
 0x1ee   : > { %1013 = vmatpush.xpose.msk.msrb.mxu0 %vm426_vm0, %v1622_v51  ;;  %1050 = vmatpush.xpose.msk.msra.mxu2 %vm426_vm0, %v1622_v51 }
 0x1ef   : > { %1051 = vmatpush.xpose.msk.msra.mxu3 %vm426_vm0, %v1622_v51 }
 0x1f2   : > { %1014 = vmatpush.xpose.msk.msrb.mxu0 %vm426_vm0, %v1631_v52  ;;  %1052 = vmatpush.xpose.msk.msra.mxu2 %vm426_vm0, %v1631_v52 }
 0x1f3   : > { %1053 = vmatpush.xpose.msk.msra.mxu3 %vm426_vm0, %v1631_v52 }
 0x1f6   : > { %1015 = vmatpush.xpose.msk.msrb.mxu0 %vm426_vm0, %v529_v53  ;;  %1054 = vmatpush.xpose.msk.msra.mxu2 %vm426_vm0, %v529_v53 }
 0x1f7   : > { %1055 = vmatpush.xpose.msk.msra.mxu3 %vm426_vm0, %v529_v53 }
 0x1fa   : > { %1016 = vmatpush.xpose.msk.msrb.mxu0 %vm426_vm0, %v526_v54  ;;  %1056 = vmatpush.xpose.msk.msra.mxu2 %vm426_vm0, %v526_v54 }
 0x1fb   : > { %1057 = vmatpush.xpose.msk.msra.mxu3 %vm426_vm0, %v526_v54 }
 0x1fe   : > { %1017 = vmatpush.xpose.msk.msrb.mxu0 %vm426_vm0, %v523_v55  ;;  %1058 = vmatpush.xpose.msk.msra.mxu2 %vm426_vm0, %v523_v55 }
 0x1ff   : > { %1059 = vmatpush.xpose.msk.msra.mxu3 %vm426_vm0, %v523_v55 }
 0x202   : > { %1018 = vmatpush.xpose.msk.msrb.mxu0 %vm426_vm0, %v520_v57  ;;  %1060 = vmatpush.xpose.msk.msra.mxu2 %vm426_vm0, %v520_v57 }
 0x203   : > { %1061 = vmatpush.xpose.msk.msra.mxu3 %vm426_vm0, %v520_v57 }
 0x206   : > { %1019 = vmatpush.xpose.msk.msrb.mxu0 %vm426_vm0, %v517_v58  ;;  %1062 = vmatpush.xpose.msk.msra.mxu2 %vm426_vm0, %v517_v58 }
 0x207   : > { %1063 = vmatpush.xpose.msk.msra.mxu3 %vm426_vm0, %v517_v58 }
 0x20a   : > { %1020 = vmatpush.xpose.msk.msrb.mxu0 %vm426_vm0, %v514_v59  ;;  %1064 = vmatpush.xpose.msk.msra.mxu2 %vm426_vm0, %v514_v59 }
 0x20b   : > { %1065 = vmatpush.xpose.msk.msra.mxu3 %vm426_vm0, %v514_v59 }
 0x20e   : > { %1021 = vmatpush.xpose.msk.msrb.mxu0 %vm426_vm0, %v511_v60  ;;  %1066 = vmatpush.xpose.msk.msra.mxu2 %vm426_vm0, %v511_v60 }
 0x20f   : > { %1067 = vmatpush.xpose.msk.msra.mxu3 %vm426_vm0, %v511_v60 }
 0x212   : > { %1022 = vmatpush.xpose.msk.msrb.mxu0 %vm426_vm0, %v508_v61  ;;  %1068 = vmatpush.xpose.msk.msra.mxu2 %vm426_vm0, %v508_v61 }
 0x213   : > { %1069 = vmatpush.xpose.msk.msra.mxu3 %vm426_vm0, %v508_v61 }
 0x216   : > { %1023 = vmatpush.xpose.msk.msrb.mxu0 %vm426_vm0, %v505_v62  ;;  %1070 = vmatpush.xpose.msk.msra.mxu2 %vm426_vm0, %v505_v62 }
 0x217   : > { %1071 = vmatpush.xpose.msk.msra.mxu3 %vm426_vm0, %v505_v62 }
 0x21a   : > { %1024 = vmatpush.xpose.msk.msrb.mxu0 %vm426_vm0, %v502_v63  ;;  %1072 = vmatpush.xpose.msk.msra.mxu2 %vm426_vm0, %v502_v63 }
 0x21b   : > { %1073 = vmatpush.xpose.msk.msra.mxu3 %vm426_vm0, %v502_v63 }
 0x21e   : > { %1025 = vmatpush.xpose.msk.msrb.mxu0 %vm426_vm0, %v499_v0  ;;  %1074 = vmatpush.xpose.msk.msra.mxu2 %vm426_vm0, %v499_v0 }
 0x21f   : > { %1075 = vmatpush.xpose.msk.msra.mxu3 %vm426_vm0, %v499_v0 }
 0x222   : > { %1026 = vmatpush.xpose.msk.msrb.mxu0 %vm426_vm0, %v496_v1  ;;  %1076 = vmatpush.xpose.msk.msra.mxu2 %vm426_vm0, %v496_v1 }
 0x223   : > { %1077 = vmatpush.xpose.msk.msra.mxu3 %vm426_vm0, %v496_v1 }
 0x226   : > { %1027 = vmatpush.xpose.msk.msrb.mxu0 %vm426_vm0, %v493_v2  ;;  %1078 = vmatpush.xpose.msk.msra.mxu2 %vm426_vm0, %v493_v2 }
 0x227   : > { %1079 = vmatpush.xpose.msk.msra.mxu3 %vm426_vm0, %v493_v2 }
 0x229   : > { %1028 = vmatmul.msk.f32.vlgmr.msrb.gmra.mxu0 %vm426_vm0, %v493_v2  ;;  %1032 = vmatmul.msk.f32.vlgmr.msra.gmra.mxu2 %vm426_vm0, %v505_v62 }
 0x22a   : > { %1039 = vmatmul.msk.f32.vlgmr.msra.gmra.mxu3 %vm426_vm0, %v526_v54 }
 0x231   : > { %1029 = vmatmul.msk.f32.gmra.mxu0 %vm426_vm0, %v496_v1  ;;  %1033 = vmatmul.msk.f32.gmra.mxu2 %vm426_vm0, %v508_v61 }
 0x232   : > { %1040 = vmatmul.msk.f32.gmra.mxu3 %vm426_vm0, %v529_v53 }
 0x239   : > { %1030 = vmatmul.msk.f32.gmra.mxu0 %vm426_vm0, %v499_v0  ;;  %1034 = vmatmul.msk.f32.gmra.mxu2 %vm426_vm0, %v511_v60 }
 0x23a   : > { %1041 = vmatmul.msk.f32.gmra.mxu3 %vm426_vm0, %v1631_v52 }
 0x241   : > { %1031 = vmatmul.msk.f32.gmra.mxu0 %vm426_vm0, %v502_v63  ;;  %1035 = vmatmul.msk.f32.gmra.mxu2 %vm426_vm0, %v514_v59 }
 0x242   : > { %1042 = vmatmul.msk.f32.gmra.mxu3 %vm426_vm0, %v1622_v51 }
 0x249   : > { %1036 = vmatmul.msk.f32.gmra.mxu2 %vm426_vm0, %v517_v58 }
 0x24a   : > { %1043 = vmatmul.msk.f32.gmra.mxu3 %vm426_vm0, %v1613_v50 }
 0x251   : > { %1037 = vmatmul.msk.f32.gmra.mxu2 %vm426_vm0, %v520_v57 }
 0x259   : > { %1038 = vmatmul.msk.f32.gmra.mxu2 %vm426_vm0, %v523_v55 }
 0x2a6   : > { %v1728_v8 = vpop.f32.mrf.mxu0 }
 0x2ac   : > { %v1722_v3 = vpop.f32.mrf.mxu2 }
 0x2ad   : > { %v638_v4 = vpop.f32.mrf.mxu3  ;;  %v734_v24 = vmax.f32 %v1728_v8, %v1722_v3 }
 0x2ae   : > { %v1732_v11 = vpop.f32.mrf.mxu0 }
 0x2b4   : > { %v1726_v6 = vpop.f32.mrf.mxu2 }
 0x2b5   : > { %v641_v7 = vpop.f32.mrf.mxu3  ;;  %v735_v21 = vmax.f32 %v1732_v11, %v1726_v6 }
 0x2b6   : > { %v1736_v14 = vpop.f32.mrf.mxu0 }
 0x2bc   : > { %v1730_v9 = vpop.f32.mrf.mxu2 }
 0x2bd   : > { %v644_v10 = vpop.f32.mrf.mxu3  ;;  %v736_v26 = vmax.f32 %v1736_v14, %v1730_v9 }
 0x2be   : > { %v1738_v20 = vpop.f32.mrf.mxu0 }
 0x2c4   : > { %v1734_v12 = vpop.f32.mrf.mxu2 }
 0x2c5   : > { %v647_v13 = vpop.f32.mrf.mxu3  ;;  %v737_v22 = vmax.f32 %v1738_v20, %v1734_v12 }
 0x2c6   : > { %v732_v32 = vsel %vm684_vm3, %v647_v13, -1e+30 }
 0x2c7   : > { %v741_v27 = vmax.f32 %v737_v22, %v638_v4 }
 0x2c9   : > { %v745_v33 = vmax.f32 %v741_v27, -1e+30 }
 0x2cc   : > { %v629_v15 = vpop.f32.mrf.mxu2 }
 0x2cd   : > { %v650_v16 = vpop.f32.mrf.mxu3  ;;  %v738_v28 = vmax.f32 %v734_v24, %v629_v15 }
 0x2cf   : > { %v742_v34 = vmax.f32 %v738_v28, %v641_v7 }
 0x2d4   : > { %v632_v19 = vpop.f32.mrf.mxu2 }
 0x2d5   : > { %v739_v25 = vmax.f32 %v735_v21, %v632_v19 }
 0x2d7   : > { %v743_v30 = vmax.f32 %v739_v25, %v644_v10 }
 0x2d9   : > { %v746_v36 = vmax.f32 %v742_v34, %v743_v30 }
 0x2dc   : > { %v635_v29 = vpop.f32.mrf.mxu2 }
 0x2dd   : > { %v740_v31 = vmax.f32 %v736_v26, %v635_v29 }
 0x2df   : > { %v744_v35 = vmax.f32 %v740_v31, %v732_v32 }
 0x2e1   : > { %v747_v37 = vmax.f32 %v744_v35, %v745_v33 }
 0x2e3   : > { %v748_v38 = vmax.f32 %v746_v36, %v747_v37  ;;  %v1156_v36 = vld [vmem:[%s1812_s5] ss:$0 sm:$0xff] }
 0x2e5   : > { %v749_v39 = vrot.slane %v748_v38, 4 }
 0x2e7   : > { %v750_v40 = vmax.f32 %v748_v38, %v749_v39  ;;  %v385_v39 = vadd.f32 %v1156_v36, %v1724_v5 }
 0x2e9   : > { %v751_v41 = vrot.slane %v750_v40, 2 }
 0x2eb   : > { %v752_v42 = vmax.f32 %v750_v40, %v751_v41 }
 0x2ed   : > { %v753_v43 = vrot.slane %v752_v42, 1 }
 0x2ef   : > { %v754_v44 = vmax.f32 %v752_v42, %v753_v43 }
 0x2f1   : > { %v770_v45 = vsub.f32 -1e+30, %v754_v44  ;;  %v769_v46 = vsub.f32 %v732_v32, %v754_v44  ;;  %v768_v47 = vsub.f32 %v644_v10, %v754_v44  ;;  %v767_v50 = vsub.f32 %v641_v7, %v754_v44 }
 0x2f2   : > { %v766_v52 = vsub.f32 %v638_v4, %v754_v44  ;;  %v765_v53 = vsub.f32 %v635_v29, %v754_v44  ;;  %v764_v55 = vsub.f32 %v632_v19, %v754_v44  ;;  %v763_v57 = vsub.f32 %v629_v15, %v754_v44 }
 0x2f3   : > { %v801_v48 = vmul.f32 1.442695, %v770_v45  ;;  %v799_v49 = vmul.f32 1.442695, %v769_v46  ;;  %v797_v51 = vmul.f32 1.442695, %v768_v47  ;;  %v756_v58 = vsub.f32 %v1732_v11, %v754_v44 }
 0x2f4   : > { %v795_v54 = vmul.f32 1.442695, %v767_v50  ;;  %v793_v56 = vmul.f32 1.442695, %v766_v52  ;;  %v791_v60 = vmul.f32 1.442695, %v765_v53  ;;  %v755_v61 = vsub.f32 %v1728_v8, %v754_v44 }
 0x2f5   : > { %1157 = vpow2.f32 %v801_v48  ;;  %v789_v62 = vmul.f32 1.442695, %v764_v55  ;;  %v762_v63 = vsub.f32 %v1734_v12, %v754_v44  ;;  %v787_v1 = vmul.f32 1.442695, %v763_v57 }
 0x2f6   : > { %1159 = vpow2.f32 %v799_v49  ;;  %v757_v2 = vsub.f32 %v1736_v14, %v754_v44  ;;  %v761_v4 = vsub.f32 %v1730_v9, %v754_v44  ;;  %v773_v7 = vmul.f32 1.442695, %v756_v58 }
 0x2f7   : > { %1161 = vpow2.f32 %v797_v51  ;;  %v758_v8 = vsub.f32 %v1738_v20, %v754_v44  ;;  %v771_v11 = vmul.f32 1.442695, %v755_v61  ;;  %v785_v12 = vmul.f32 1.442695, %v762_v63 }
 0x2f8   : > { %1163 = vpow2.f32 %v795_v54  ;;  %v760_v13 = vsub.f32 %v1726_v6, %v754_v44  ;;  %v759_v14 = vsub.f32 %v1722_v3, %v754_v44  ;;  %v775_v16 = vmul.f32 1.442695, %v757_v2 }
 0x2f9   : > { %1165 = vpow2.f32 %v793_v56  ;;  %v783_v9 = vmul.f32 1.442695, %v761_v4  ;;  %v777_v18 = vmul.f32 1.442695, %v758_v8 }
 0x2fa   : > { %1167 = vpow2.f32 %v791_v60  ;;  %v781_v19 = vmul.f32 1.442695, %v760_v13  ;;  %v779_v21 = vmul.f32 1.442695, %v759_v14 }
 0x2fb   : > { %v1749_v59 = vpop.eup %1157  ;;  %1169 = vpow2.f32 %v789_v62 }
 0x2fc   : > { %829 = vmatpush.msrb.mxu3 %v1749_v59  ;;  %v1754_v0 = vpop.eup %1159  ;;  %1171 = vpow2.f32 %v787_v1 }
 0x2fd   : > { %v1759_v10 = vpop.eup %1161  ;;  %1173 = vpow2.f32 %v773_v7 }
 0x2fe   : > { %830 = vmatpush.msrb.mxu3 %v1754_v0  ;;  %v1164_v15 = vpop.eup %1163  ;;  %1175 = vpow2.f32 %v771_v11 }
 0x2ff   : > { %v1166_v17 = vpop.eup %1165  ;;  %1177 = vpow2.f32 %v785_v12 }
 0x300   : > { %831 = vmatpush.msrb.mxu3 %v1759_v10  ;;  %v1168_v20 = vpop.eup %1167  ;;  %1179 = vpow2.f32 %v775_v16 }
 0x301   : > { %v1170_v22 = vpop.eup %1169  ;;  %1181 = vpow2.f32 %v783_v9 }
 0x302   : > { %832 = vmatpush.msrb.mxu3 %v1164_v15  ;;  %v1172_v6 = vpop.eup %1171  ;;  %1183 = vpow2.f32 %v777_v18 }
 0x303   : > { %v1174_v23 = vpop.eup %1173  ;;  %1185 = vpow2.f32 %v781_v19 }
 0x304   : > { %833 = vmatpush.msrb.mxu3 %v1166_v17  ;;  %v1176_v3 = vpop.eup %1175  ;;  %1187 = vpow2.f32 %v779_v21 }
 0x305   : > { %v1178_v24 = vpop.eup %1177  ;;  %v803_v25 = vadd.f32 %v1176_v3, %v1174_v23 }
 0x306   : > { %834 = vmatpush.msrb.mxu3 %v1168_v20  ;;  %v1180_v26 = vpop.eup %1179 }
 0x307   : > { %v1182_v27 = vpop.eup %1181  ;;  %v804_v28 = vadd.f32 %v1180_v26, %v803_v25 }
 0x308   : > { %835 = vmatpush.msrb.mxu3 %v1170_v22  ;;  %v1184_v29 = vpop.eup %1183 }
 0x309   : > { %v1186_v30 = vpop.eup %1185  ;;  %v805_v31 = vadd.f32 %v1184_v29, %v804_v28 }
 0x30a   : > { %836 = vmatpush.msrb.mxu3 %v1172_v6  ;;  %v1188_v32 = vpop.eup %1187 }
 0x30b   : > { %v806_v33 = vadd.f32 %v1188_v32, %v805_v31 }
 0x30c   : > { %837 = vmatpush.msrb.mxu3 %v1178_v24 }
 0x30d   : > { %v807_v34 = vadd.f32 %v1186_v30, %v806_v33 }
 0x30e   : > { %838 = vmatpush.msrb.mxu3 %v1182_v27 }
 0x30f   : > { %v808_v35 = vadd.f32 %v1182_v27, %v807_v34 }
 0x310   : > { %839 = vmatpush.msrb.mxu3 %v1186_v30 }
 0x311   : > { %v809_v37 = vadd.f32 %v1178_v24, %v808_v35 }
 0x312   : > { %840 = vmatpush.msrb.mxu3 %v1188_v32 }
 0x313   : > { %v810_v38 = vadd.f32 %v1172_v6, %v809_v37 }
 0x314   : > { %841 = vmatpush.msrb.mxu3 %v1184_v29 }
 0x315   : > { %v811_v40 = vadd.f32 %v1170_v22, %v810_v38 }
 0x316   : > { %842 = vmatpush.msrb.mxu3 %v1180_v26 }
 0x317   : > { %v812_v41 = vadd.f32 %v1168_v20, %v811_v40 }
 0x318   : > { %843 = vmatpush.msrb.mxu3 %v1174_v23 }
 0x319   : > { %v813_v42 = vadd.f32 %v1166_v17, %v812_v41 }
 0x31a   : > { %844 = vmatpush.msrb.mxu3 %v1176_v3 }
 0x31b   : > { %845 = vmatmul.f32.vlgmr.msrb.gmra.mxu3 %v385_v39  ;;  %v814_v43 = vadd.f32 %v1164_v15, %v813_v42 }
 0x31d   : > { %v815_v44 = vadd.f32 %v1759_v10, %v814_v43 }
 0x31f   : > { %v816_v45 = vadd.f32 %v1754_v0, %v815_v44 }
 0x321   : > { %v817_v46 = vadd.f32 %v1749_v59, %v816_v45 }
 0x323   : > { %v818_v47 = vrot.slane %v817_v46, 4 }
 0x325   : > { %v819_v48 = vadd.f32 %v818_v47, %v817_v46 }
 0x327   : > { %v820_v49 = vrot.slane %v819_v48, 2 }
 0x329   : > { %v821_v50 = vadd.f32 %v820_v49, %v819_v48 }
 0x32b   : > { %v822_v51 = vrot.slane %v821_v50, 1 }
 0x32d   : > { %v823_v5 = vadd.f32 %v822_v51, %v821_v50 }
 0x32f   : > { %1189 = vrcp.f32 %v823_v5 }
 0x335   : > { %v1190_v52 = vpop.eup %1189 }
 0x336   : > { %v825_v53 = vmul.f32 %v1190_v52, %v823_v5 }
 0x338   : > { %v826_v54 = vsub.f32 2.0, %v825_v53 }
 0x33a   : > { %v827_v55 = vmul.f32 %v1190_v52, %v826_v54 }
 0x39e   : > { %v846_v56 = vpop.f32.mrf.mxu3 }
 0x39f   : > { %v849_v57 = vmul.f32 %v846_v56, %v827_v55 }
 0x3a1   : > { %850 = vst.msk [vmem:[%s338_s26] sm:$0xff] %vm359_vm2, %v849_v57 }
 0x3a2   : > { %1338 = shalt.err (!%p1335_p12)
}
 0x3a3   : > { %1092 = dma.vmem_to_hbm [thread:$0]  (%p1499_p5), %s865_s10, 128, %s867_s13, %s852_s17  }
 0x3a4 PF: > { %s878_s2 = sand.u32 1, %s1377_s21   ;;  %p1829_p13 = scmp.ge.s32.totalorder %s1389_s24, 2 }
 0x3a5   : > { %s879_s15 = scalar_lea.sflag [#allocation5], %s878_s2 }
 0x3a6   : > { %p1109_p9 = pnand %p1829_p13, %p1465_p6 }
 0x3a8   : > { %p1110_p0 = pneg %p1109_p9 }
 0x3aa   : > { %1372 = dma.done.wait (%p1110_p0), %s879_s15, 128  }
 0x3ab   : > { %1374 = vsyncadd (%p1110_p0), %s879_s15, 4294967168  ;;  %s1830_s24 = sld [smem:[#allocation18_spill]]  ;;  %s1833_s21 = smov %s1381_s22 }
 0x3ac   : > { %s1831_s27 = sld [smem:[#allocation17_spill]] }
 0x3ad   : > { %s1832_s23 = sld [smem:[#allocation19_spill]] }
 0x3b1   : > { %p23_p3 = scmp.ge.s32.totalorder %s1830_s24, 4  }
 0x3b2   : > { %s1834_s22 = smov %s1831_s27 }
 0x3b3   :  { %25 = sbr.rel (!%p23_p3) target bundleno = 11 (0xb), region = 110 }
 0x3b8   :  { %885 = vsyncpa [#allocation4], 1 }
 0x3b9   :  { %887 = vsyncpa [#allocation4 + $0x1], 1 }
 0x3ba   :  { %888 = vsyncpa [#allocation7], 1 }
 0x3bb   :  { %890 = vsyncpa [#allocation7 + $0x1], 1 }
 0x3bc   :  { %891 = vsyncpa [#allocation10], 1 }
 0x3bd   :  { %892 = vsyncpa [#allocation5], 1 }
 0x3be   :  { %894 = vsyncpa [#allocation5 + $0x1], 1 }

</bundles_post_ra>
